<compile_context>
chip_gen: v7x
topology: tpu7x:2x2x1
jax: 0.10.0
libtpu: 0.0.40
codegen_flags: <defaults>
</compile_context>

<pallas_src>
import numpy as np
import jax
import jax.numpy as jnp
from jax import lax
from jax.experimental import pallas as pl
from jax.experimental.pallas import tpu as pltpu


# ----------------------------- Pallas kernel --------------------------------
def _make_kernel(KW2, W2, windows):
    """windows: static tuple of (lo, hi) lane ranges for the max-pool output."""

    def kernel(patch_ref, w1_ref, w2_ref, bias_ref, out_ref):
        # conv1 (+ folded BN1 scale) as ONE batched matmul:
        #   (Bb, C, K1) x (Bb, K1, W1) -> (Bb, C, W1)
        y1 = jnp.einsum("bck,bkw->bcw", w1_ref[...], patch_ref[...],
                        preferred_element_type=jnp.float32)
        y1 = jnp.maximum(y1 + bias_ref[0], 0.0)                 # BN1 bias + ReLU

        # conv2 (1, KW2): im2col built along the SUBLANE axis. Each tap is a
        # lane-shifted view of y1; the concat offsets are t*C_out (multiples
        # of 8), so placement needs no sublane relayout. One K = KW2*C_out
        # matmul instead of 11 tiny ones.
        cols = jnp.concatenate([y1[:, :, t:t + W2] for t in range(KW2)], axis=1)
        y2 = jnp.einsum("bck,bkw->bcw", w2_ref[...], cols,
                        preferred_element_type=jnp.float32)     # (Bb, C, W2)
        y2 = jnp.maximum(y2 + bias_ref[1], 0.0)                 # BN2 bias + ReLU

        # MaxPool1d(pool_k, stride=pool_k, padding=pool_pad): all clipped
        # windows are non-empty (asserted at trace time), so no -inf padding
        # and no odd-sized concatenate - each output lane is a static
        # lane-slice max over the valid part of its window.
        pooled = jnp.concatenate(
            [jnp.max(y2[:, :, lo:hi], axis=-1, keepdims=True) for lo, hi in windows],
            axis=-1)                                            # (Bb, C, L_out)

        # Output written directly in the PyTorch (B, C_out, L_out) layout:
        # no in-kernel reshape/transpose, no wrapper post-processing.
        out_ref[...] = pooled

    return kernel


# ------------------------------- glue ---------------------------------------
def _im2col(x, kh, kw, sh, sw):
    """x: (N, C, H, W) -> patches (N, H1, W1, C*kh*kw) ordered (C, kh, kw)."""
    N, C, H, W = x.shape
    H1 = (H - kh) // sh + 1
    W1 = (W - kw) // sw + 1
    cols = []
    for i in range(kh):
        for j in range(kw):
            cols.append(x[:, :, i:i + sh * (H1 - 1) + 1:sh,
                             j:j + sw * (W1 - 1) + 1:sw])        # (N,C,H1,W1)
    p = jnp.stack(cols, axis=-1)                                 # (N,C,H1,W1,kh*kw)
    p = jnp.transpose(p, (0, 2, 3, 1, 4))                        # (N,H1,W1,C,kh*kw)
    return p.reshape(N, H1, W1, C * kh * kw), H1, W1


def _fold_bn(conv_bias, gamma, beta, mean, var, eps=1e-5):
    scale = gamma / jnp.sqrt(var + eps)
    bias = scale * (conv_bias - mean) + beta
    return scale, bias


def resolution_branch(x, p, *, kernel_size, stride, pooling_kernel,
                      batch_block=None):
    """Pallas implementation of ResolutionBranch.forward for NCHW input x."""
    kh, kw = kernel_size
    N, C_in, H, W = x.shape
    C_out = p["w1"].shape[0]
    KW2 = p["w2"].shape[-1]                   # 11
    pool_pad = 6                              # nn.MaxPool1d(pooling_kernel, padding=6)

    # ---- conv1 im2col (wrapper-side layout plumbing, free under XLA) --------
    # TODO(synk): fold im2col into the kernel (strided lane reads of x) once
    # W/N grow enough for the patch slab's HBM read-amplification to matter.
    patches, H1, W1 = _im2col(x, kh, kw, stride, stride)         # (N, H1, W1, K1)
    assert H1 == 1, "branch assumes conv1 collapses H so squeeze(dim=2) is valid"
    K1 = C_in * kh * kw
    patchesT = jnp.transpose(patches.reshape(N, W1, K1), (0, 2, 1))   # (N, K1, W1)

    # ---- static pooling geometry + trace-time guards ------------------------
    W2 = W1 - (KW2 - 1)
    assert W2 >= 1, "conv2 kernel wider than conv1 output"
    assert 2 * pool_pad <= pooling_kernel, "MaxPool1d requires padding <= kernel//2"
    L_out = (W2 + 2 * pool_pad - pooling_kernel) // pooling_kernel + 1
    assert L_out >= 1
    windows = []
    for l in range(L_out):
        lo = max(0, l * pooling_kernel - pool_pad)
        hi = min(W2, (l + 1) * pooling_kernel - pool_pad)
        assert hi > lo, "empty pooling window - geometry not supported"
        windows.append((lo, hi))

    # ---- fold BN (inference running stats) into weights / biases ------------
    s1, bias1 = _fold_bn(p["b1"], p["bn1_g"], p["bn1_b"], p["bn1_m"], p["bn1_v"])
    s2, bias2 = _fold_bn(p["b2"], p["bn2_g"], p["bn2_b"], p["bn2_m"], p["bn2_v"])

    # conv1 lhs (C_out, K1) with BN1 scale folded into the rows.
    w1_mat = p["w1"].reshape(C_out, K1) * s1[:, None]
    # conv2 lhs (C_out, KW2*C_out), column order (tap, c_in) matching the
    # in-kernel sublane-concat im2col; BN2 scale folded in.
    w2_mat = (jnp.transpose(p["w2"][:, :, 0, :], (0, 2, 1)).reshape(C_out, KW2 * C_out)
              * s2[:, None])
    # Pre-broadcast over batch so the in-kernel contraction is a plain batched
    # matmul (avoids a (c,b,w)->(b,c,w) relayout inside the kernel).
    w1b = jnp.broadcast_to(w1_mat[None], (N, C_out, K1))
    w2b = jnp.broadcast_to(w2_mat[None], (N, C_out, KW2 * C_out))
    biases = jnp.stack([bias1, bias2], axis=0).reshape(2, C_out, 1)

    # ---- grid: single step by default (tiny per-step work); split for v7x ---
    Bb = N if batch_block is None else batch_block
    assert N % Bb == 0

    kernel = _make_kernel(KW2, W2, tuple(windows))
    out = pl.pallas_call(
        kernel,
        out_shape=jax.ShapeDtypeStruct((N, C_out, L_out), jnp.float32),
        grid=(N // Bb,),
        in_specs=[
            pl.BlockSpec((Bb, K1, W1), lambda n: (n, 0, 0)),              # patches^T
            pl.BlockSpec((Bb, C_out, K1), lambda n: (n, 0, 0)),           # conv1 w (scaled)
            pl.BlockSpec((Bb, C_out, KW2 * C_out), lambda n: (n, 0, 0)),  # conv2 w (scaled)
            pl.BlockSpec((2, C_out, 1), lambda n: (0, 0, 0)),             # folded BN biases
        ],
        out_specs=pl.BlockSpec((Bb, C_out, L_out), lambda n: (n, 0, 0)),
        compiler_params=pltpu.CompilerParams(dimension_semantics=("parallel",)),
    )(patchesT, w1b, w2b, biases)

    return out                                  # already (N, C_out, L_out)


# ------------------------- pure-JAX reference --------------------------------
def reference(x, p, *, kernel_size, stride, pooling_kernel, eps=1e-5):
    def conv_bn_relu(inp, w, b, g, beta, m, v, strides):
        y = lax.conv_general_dilated(
            inp, w, window_strides=strides, padding="VALID",
            dimension_numbers=("NCHW", "OIHW", "NCHW"))
        y = y + b[None, :, None, None]
        y = (g[None, :, None, None] * (y - m[None, :, None, None])
             / jnp.sqrt(v + eps)[None, :, None, None] + beta[None, :, None, None])
        return jnp.maximum(y, 0.0)

    y = conv_bn_relu(x, p["w1"], p["b1"], p["bn1_g"], p["bn1_b"],
                     p["bn1_m"], p["bn1_v"], (stride, stride))
    y = conv_bn_relu(y, p["w2"], p["b2"], p["bn2_g"], p["bn2_b"],
                     p["bn2_m"], p["bn2_v"], (1, 1))
    y = jnp.squeeze(y, axis=2)                                   # (N, C, W2)
    y = lax.reduce_window(y, -jnp.inf, lax.max,
                          window_dimensions=(1, 1, pooling_kernel),
                          window_strides=(1, 1, pooling_kernel),
                          padding=[(0, 0), (0, 0), (6, 6)])
    return y


# ---------------------------------- main -------------------------------------
if __name__ == "__main__":
    key = jax.random.PRNGKey(0)
    ks = jax.random.split(key, 13)

    # module hyper-parameters (small, consistent with the forward pass)
    C_in, C_out = 1, 8
    kernel_size = (8, 9)       # kh == H so conv1 collapses the frequency axis
    stride = 2
    pooling_kernel = 12        # must be >= 12 because MaxPool1d padding=6
    N, H, W = 2, 8, 128

    p = dict(
        w1=0.1 * jax.random.normal(ks[0], (C_out, C_in, *kernel_size), jnp.float32),
        b1=0.1 * jax.random.normal(ks[1], (C_out,), jnp.float32),
        bn1_g=1.0 + 0.1 * jax.random.normal(ks[2], (C_out,), jnp.float32),
        bn1_b=0.1 * jax.random.normal(ks[3], (C_out,), jnp.float32),
        bn1_m=0.1 * jax.random.normal(ks[4], (C_out,), jnp.float32),
        bn1_v=jnp.abs(1.0 + 0.1 * jax.random.normal(ks[5], (C_out,), jnp.float32)),
        w2=0.1 * jax.random.normal(ks[6], (C_out, C_out, 1, 11), jnp.float32),
        b2=0.1 * jax.random.normal(ks[7], (C_out,), jnp.float32),
        bn2_g=1.0 + 0.1 * jax.random.normal(ks[8], (C_out,), jnp.float32),
        bn2_b=0.1 * jax.random.normal(ks[9], (C_out,), jnp.float32),
        bn2_m=0.1 * jax.random.normal(ks[10], (C_out,), jnp.float32),
        bn2_v=jnp.abs(1.0 + 0.1 * jax.random.normal(ks[11], (C_out,), jnp.float32)),
    )
    x = jax.random.normal(ks[12], (N, C_in, H, W), jnp.float32)

    out = resolution_branch(x, p, kernel_size=kernel_size, stride=stride,
                            pooling_kernel=pooling_kernel)
    out = jax.block_until_ready(out)

    ref = reference(x, p, kernel_size=kernel_size, stride=stride,
                    pooling_kernel=pooling_kernel)
    assert out.shape == ref.shape, (out.shape, ref.shape)
    np.testing.assert_allclose(np.asarray(out), np.asarray(ref),
                               rtol=2e-5, atol=2e-5)
    print("KERNEL_OK")
</pallas_src>

<mosaic_0001>
module attributes {stable_mosaic.version = 11 : i64} {
  func.func @kernel(%arg0: i32, %arg1: memref<2x72x60xf32, #tpu.memory_space<vmem>>, %arg2: memref<2x8x72xf32, #tpu.memory_space<vmem>>, %arg3: memref<2x8x88xf32, #tpu.memory_space<vmem>>, %arg4: memref<2x8x1xf32, #tpu.memory_space<vmem>>, %arg5: memref<2x8x5xf32, #tpu.memory_space<vmem>>) attributes {dimension_semantics = [#tpu.dimension_semantics<parallel>], iteration_bounds = array<i64: 1>, scalar_prefetch = 0 : i64, scratch_operands = 0 : i64, tpu.core_type = #tpu.core_type<tc>, window_params = [{transform_indices = @transform_0, window_bounds = array<i64: 2, 72, 60>}, {transform_indices = @transform_1, window_bounds = array<i64: 2, 8, 72>}, {transform_indices = @transform_2, window_bounds = array<i64: 2, 8, 88>}, {pipeline_mode = #tpu.pipeline_mode<synchronous>, transform_indices = @transform_3, window_bounds = array<i64: 2, 8, 1>}, {transform_indices = @transform_4, window_bounds = array<i64: 2, 8, 5>}]} {
    %c0 = arith.constant 0 : index
    %c0_0 = arith.constant 0 : index
    %c0_1 = arith.constant 0 : index
    %0 = vector.load %arg2[%c0, %c0_0, %c0_1] : memref<2x8x72xf32, #tpu.memory_space<vmem>>, vector<2x8x72xf32>
    %c0_2 = arith.constant 0 : index
    %c0_3 = arith.constant 0 : index
    %c0_4 = arith.constant 0 : index
    %1 = vector.load %arg1[%c0_2, %c0_3, %c0_4] : memref<2x72x60xf32, #tpu.memory_space<vmem>>, vector<2x72x60xf32>
    "tpu.trace_start"() <{level = 10 : i32, message = "bck,bkw->bcw"}> : () -> ()
    %cst = arith.constant dense<0.000000e+00> : vector<2x8x60xf32>
    %2 = tpu.matmul %0, %1, %cst {dimension_numbers = #tpu.dot_dimension_numbers<[2], [1], [1], [2], [0, 0, 0, 1, 1, 2], [0], [0]>} : vector<2x8x72xf32>, vector<2x72x60xf32>, vector<2x8x60xf32> -> vector<2x8x60xf32>
    "tpu.trace_stop"() : () -> ()
    %c0_5 = arith.constant 0 : index
    %c0_6 = arith.constant 0 : index
    %c0_7 = arith.constant 0 : index
    %3 = vector.load %arg4[%c0_5, %c0_6, %c0_7] : memref<2x8x1xf32, #tpu.memory_space<vmem>>, vector<1x8x1xf32>
    %4 = vector.shape_cast %3 : vector<1x8x1xf32> to vector<8x1xf32>
    %5 = vector.shape_cast %4 : vector<8x1xf32> to vector<1x8x1xf32>
    %6 = vector.broadcast %5 : vector<1x8x1xf32> to vector<2x8x60xf32>
    %7 = arith.addf %2, %6 : vector<2x8x60xf32>
    %cst_8 = arith.constant 0.000000e+00 : f32
    %8 = vector.broadcast %cst_8 : f32 to vector<2x8x60xf32>
    %9 = arith.maximumf %7, %8 : vector<2x8x60xf32>
    %10 = vector.extract_strided_slice %9 {offsets = [0, 0, 0], sizes = [2, 8, 50], strides = [1, 1, 1]} : vector<2x8x60xf32> to vector<2x8x50xf32>
    %11 = vector.extract_strided_slice %9 {offsets = [0, 0, 1], sizes = [2, 8, 50], strides = [1, 1, 1]} : vector<2x8x60xf32> to vector<2x8x50xf32>
    %12 = vector.extract_strided_slice %9 {offsets = [0, 0, 2], sizes = [2, 8, 50], strides = [1, 1, 1]} : vector<2x8x60xf32> to vector<2x8x50xf32>
    %13 = vector.extract_strided_slice %9 {offsets = [0, 0, 3], sizes = [2, 8, 50], strides = [1, 1, 1]} : vector<2x8x60xf32> to vector<2x8x50xf32>
    %14 = vector.extract_strided_slice %9 {offsets = [0, 0, 4], sizes = [2, 8, 50], strides = [1, 1, 1]} : vector<2x8x60xf32> to vector<2x8x50xf32>
    %15 = vector.extract_strided_slice %9 {offsets = [0, 0, 5], sizes = [2, 8, 50], strides = [1, 1, 1]} : vector<2x8x60xf32> to vector<2x8x50xf32>
    %16 = vector.extract_strided_slice %9 {offsets = [0, 0, 6], sizes = [2, 8, 50], strides = [1, 1, 1]} : vector<2x8x60xf32> to vector<2x8x50xf32>
    %17 = vector.extract_strided_slice %9 {offsets = [0, 0, 7], sizes = [2, 8, 50], strides = [1, 1, 1]} : vector<2x8x60xf32> to vector<2x8x50xf32>
    %18 = vector.extract_strided_slice %9 {offsets = [0, 0, 8], sizes = [2, 8, 50], strides = [1, 1, 1]} : vector<2x8x60xf32> to vector<2x8x50xf32>
    %19 = vector.extract_strided_slice %9 {offsets = [0, 0, 9], sizes = [2, 8, 50], strides = [1, 1, 1]} : vector<2x8x60xf32> to vector<2x8x50xf32>
    %20 = vector.extract_strided_slice %9 {offsets = [0, 0, 10], sizes = [2, 8, 50], strides = [1, 1, 1]} : vector<2x8x60xf32> to vector<2x8x50xf32>
    %21 = tpu.concatenate %10, %11, %12, %13, %14, %15, %16, %17, %18, %19, %20 in 1 : vector<2x8x50xf32>, vector<2x8x50xf32>, vector<2x8x50xf32>, vector<2x8x50xf32>, vector<2x8x50xf32>, vector<2x8x50xf32>, vector<2x8x50xf32>, vector<2x8x50xf32>, vector<2x8x50xf32>, vector<2x8x50xf32>, vector<2x8x50xf32> -> vector<2x88x50xf32>
    %c0_9 = arith.constant 0 : index
    %c0_10 = arith.constant 0 : index
    %c0_11 = arith.constant 0 : index
    %22 = vector.load %arg3[%c0_9, %c0_10, %c0_11] : memref<2x8x88xf32, #tpu.memory_space<vmem>>, vector<2x8x88xf32>
    "tpu.trace_start"() <{level = 10 : i32, message = "bck,bkw->bcw"}> : () -> ()
    %cst_12 = arith.constant dense<0.000000e+00> : vector<2x8x50xf32>
    %23 = tpu.matmul %22, %21, %cst_12 {dimension_numbers = #tpu.dot_dimension_numbers<[2], [1], [1], [2], [0, 0, 0, 1, 1, 2], [0], [0]>} : vector<2x8x88xf32>, vector<2x88x50xf32>, vector<2x8x50xf32> -> vector<2x8x50xf32>
    "tpu.trace_stop"() : () -> ()
    %c1 = arith.constant 1 : index
    %c0_13 = arith.constant 0 : index
    %c0_14 = arith.constant 0 : index
    %24 = vector.load %arg4[%c1, %c0_13, %c0_14] : memref<2x8x1xf32, #tpu.memory_space<vmem>>, vector<1x8x1xf32>
    %25 = vector.shape_cast %24 : vector<1x8x1xf32> to vector<8x1xf32>
    %26 = vector.shape_cast %25 : vector<8x1xf32> to vector<1x8x1xf32>
    %27 = vector.broadcast %26 : vector<1x8x1xf32> to vector<2x8x50xf32>
    %28 = arith.addf %23, %27 : vector<2x8x50xf32>
    %cst_15 = arith.constant 0.000000e+00 : f32
    %29 = vector.broadcast %cst_15 : f32 to vector<2x8x50xf32>
    %30 = arith.maximumf %28, %29 : vector<2x8x50xf32>
    %31 = vector.extract_strided_slice %30 {offsets = [0, 0, 0], sizes = [2, 8, 6], strides = [1, 1, 1]} : vector<2x8x50xf32> to vector<2x8x6xf32>
    %cst_16 = arith.constant dense<0xFF800000> : vector<2x8xf32>
    %32 = vector.multi_reduction <maximumf>, %31, %cst_16 [2] : vector<2x8x6xf32> to vector<2x8xf32>
    %33 = vector.shape_cast %32 : vector<2x8xf32> to vector<2x8x1xf32>
    %34 = vector.extract_strided_slice %30 {offsets = [0, 0, 6], sizes = [2, 8, 12], strides = [1, 1, 1]} : vector<2x8x50xf32> to vector<2x8x12xf32>
    %cst_17 = arith.constant dense<0xFF800000> : vector<2x8xf32>
    %35 = vector.multi_reduction <maximumf>, %34, %cst_17 [2] : vector<2x8x12xf32> to vector<2x8xf32>
    %36 = vector.shape_cast %35 : vector<2x8xf32> to vector<2x8x1xf32>
    %37 = vector.extract_strided_slice %30 {offsets = [0, 0, 18], sizes = [2, 8, 12], strides = [1, 1, 1]} : vector<2x8x50xf32> to vector<2x8x12xf32>
    %cst_18 = arith.constant dense<0xFF800000> : vector<2x8xf32>
    %38 = vector.multi_reduction <maximumf>, %37, %cst_18 [2] : vector<2x8x12xf32> to vector<2x8xf32>
    %39 = vector.shape_cast %38 : vector<2x8xf32> to vector<2x8x1xf32>
    %40 = vector.extract_strided_slice %30 {offsets = [0, 0, 30], sizes = [2, 8, 12], strides = [1, 1, 1]} : vector<2x8x50xf32> to vector<2x8x12xf32>
    %cst_19 = arith.constant dense<0xFF800000> : vector<2x8xf32>
    %41 = vector.multi_reduction <maximumf>, %40, %cst_19 [2] : vector<2x8x12xf32> to vector<2x8xf32>
    %42 = vector.shape_cast %41 : vector<2x8xf32> to vector<2x8x1xf32>
    %43 = vector.extract_strided_slice %30 {offsets = [0, 0, 42], sizes = [2, 8, 8], strides = [1, 1, 1]} : vector<2x8x50xf32> to vector<2x8x8xf32>
    %cst_20 = arith.constant dense<0xFF800000> : vector<2x8xf32>
    %44 = vector.multi_reduction <maximumf>, %43, %cst_20 [2] : vector<2x8x8xf32> to vector<2x8xf32>
    %45 = vector.shape_cast %44 : vector<2x8xf32> to vector<2x8x1xf32>
    %46 = tpu.concatenate %33, %36, %39, %42, %45 in 2 : vector<2x8x1xf32>, vector<2x8x1xf32>, vector<2x8x1xf32>, vector<2x8x1xf32>, vector<2x8x1xf32> -> vector<2x8x5xf32>
    %c0_21 = arith.constant 0 : index
    %c0_22 = arith.constant 0 : index
    %c0_23 = arith.constant 0 : index
    %47 = vector.load %arg5[%c0_21, %c0_22, %c0_23] : memref<2x8x5xf32, #tpu.memory_space<vmem>>, vector<2x8x5xf32>
    tpu.vector_store %arg5[%c0_21, %c0_22, %c0_23], %46 {strides = array<i32>} : memref<2x8x5xf32, #tpu.memory_space<vmem>>, vector<2x8x5xf32>,
    return
  }
  func.func @transform_0(%arg0: i32) -> (i32, i32, i32) {
    %c0_i32 = arith.constant 0 : i32
    %c0_i32_0 = arith.constant 0 : i32
    %c0_i32_1 = arith.constant 0 : i32
    return %arg0, %c0_i32, %c0_i32_0 : i32, i32, i32
  }
  func.func @transform_1(%arg0: i32) -> (i32, i32, i32) {
    %c0_i32 = arith.constant 0 : i32
    %c0_i32_0 = arith.constant 0 : i32
    %c0_i32_1 = arith.constant 0 : i32
    return %arg0, %c0_i32, %c0_i32_0 : i32, i32, i32
  }
  func.func @transform_2(%arg0: i32) -> (i32, i32, i32) {
    %c0_i32 = arith.constant 0 : i32
    %c0_i32_0 = arith.constant 0 : i32
    %c0_i32_1 = arith.constant 0 : i32
    return %arg0, %c0_i32, %c0_i32_0 : i32, i32, i32
  }
  func.func @transform_3(%arg0: i32) -> (i32, i32, i32) {
    %c0_i32 = arith.constant 0 : i32
    %c0_i32_0 = arith.constant 0 : i32
    %c0_i32_1 = arith.constant 0 : i32
    %c0_i32_2 = arith.constant 0 : i32
    return %c0_i32, %c0_i32_0, %c0_i32_1 : i32, i32, i32
  }
  func.func @transform_4(%arg0: i32) -> (i32, i32, i32) {
    %c0_i32 = arith.constant 0 : i32
    %c0_i32_0 = arith.constant 0 : i32
    %c0_i32_1 = arith.constant 0 : i32
    return %arg0, %c0_i32, %c0_i32_0 : i32, i32, i32
  }
}

</mosaic_0001>

<bundles_post_ra>
// kernel: tpu_custom_call.1
= control target key start
LH: loop header
LB: loop body
LE: loop exit
PB: predicated region body
PF: predicated region fallthrough
CT: control target
= control target key end

     0   :  { %v721_v0 = vmov 0.0|0.0   ;;  %vm722_vm0 = vmmov 0   ;;  %v723_v8 = vmov 0.0   ;;  %v724_v12 = vmov 0   ;;  %s727_s5 = smov 125   ;;  %s728_s6 = smov 124   ;;  %s868_s0 = inlined_call_operand.vmem [shape: f32[2,72,60], index: 0, kind: input, shape index: {}]   ;;  %s869_s3 = inlined_call_operand.vmem [shape: f32[2,8,1], index: 3, kind: input, shape index: {}]   ;;  %s870_s1 = inlined_call_operand.vmem [shape: f32[2,8,72], index: 1, kind: input, shape index: {}]   ;;  %s871_s2 = inlined_call_operand.vmem [shape: f32[2,8,88], index: 2, kind: input, shape index: {}]   ;;  %s872_s4 = inlined_call_operand.vmem [shape: f32[2,8,5], index: 4, kind: output, shape index: {}]  }
   0x1   :  { %607 = vmatprep.subr.bf16.mxu0 %v721_v0  ;;  %619 = vmatprep.subr.bf16.mxu1 %v721_v0  ;;  %v19_v1 = vld [vmem:[%s868_s0] sm:$0xff]  ;;  %v20_v2 = vld [vmem:[%s868_s0 + $0x8] sm:$0xff]  ;;  %v29_v5 = vld [vmem:[%s868_s0 + $0x50] sm:$0xff]  ;;  %vm43_vm1 = vcmask 588800   ;;  %s729_s7 = smov 123   ;;  %s730_s8 = smov 122  }
   0x2   :  { %v28_v3 = vld [vmem:[%s868_s0 + $0x48] sm:$0xff]  ;;  %v608_v4 = vpack.c.bf16 %v20_v2, %v19_v1  ;;  %v21_v6 = vld [vmem:[%s868_s0 + $0x10] sm:$0xff]  ;;  %v22_v7 = vld [vmem:[%s868_s0 + $0x18] sm:$0xff]  ;;  %533 = vmatprep.mubr.msk.f32.mxu0 %vm722_vm0, %v723_v8  ;;  %554 = vmatprep.mubr.msk.f32.mxu1 %vm722_vm0, %v723_v8  ;;  %s731_s9 = smov 121   ;;  %s732_s10 = smov 120   ;;  %vm263_vm2 = vcmask 719872  }
   0x3   :  { %v620_v9 = vpack.c.bf16 %v29_v5, %v28_v3  ;;  %v30_v10 = vld [vmem:[%s868_s0 + $0x58] sm:$0xff]  ;;  %v31_v11 = vld [vmem:[%s868_s0 + $0x60] sm:$0xff]  ;;  %675 = vset.pattern.permute.xlu0 %v724_v12  ;;  %v611_v13 = vpack.c.bf16 %v22_v7, %v21_v6  ;;  %v24_v16 = vld [vmem:[%s868_s0 + $0x28] sm:$0xff]  ;;  %s733_s11 = smov 119   ;;  %s734_s12 = smov 118   ;;  %vm412_vm3 = vcmask 48128  }
   0x4   :  { %609 = vmatpush3.bf16.msra.mxu0 %v608_v4  ;;  %v623_v14 = vpack.c.bf16 %v31_v11, %v30_v10  ;;  %v23_v15 = vld [vmem:[%s868_s0 + $0x20] sm:$0xff]  ;;  %v32_v17 = vld [vmem:[%s868_s0 + $0x68] sm:$0xff]  ;;  %v33_v18 = vld [vmem:[%s868_s0 + $0x70] sm:$0xff]  ;;  %vm419_vm4 = vcmask 146480   ;;  %vm426_vm5 = vcmask 244880   ;;  %vm433_vm6 = vcmask 343280  }
   0x5   :  { %621 = vmatpush3.bf16.msra.mxu1 %v620_v9  ;;  %610 = vmatprep.subr.bf16.mxu0 %v721_v0  ;;  %v37_v19 = vld [vmem:[%s869_s3] sm:$0xff]  ;;  %v614_v20 = vpack.c.bf16 %v24_v16, %v23_v15  ;;  %v626_v21 = vpack.c.bf16 %v33_v18, %v32_v17  ;;  %v25_v22 = vld [vmem:[%s868_s0 + $0x30] sm:$0xff]  ;;  %v26_v23 = vld [vmem:[%s868_s0 + $0x38] sm:$0xff]  ;;  %vm440_vm7 = vcmask 408912   ;;  %vm447_vm8 = vcmask 7168  }
   0x6   :  { %622 = vmatprep.subr.bf16.mxu1 %v721_v0  ;;  %40 = vperm.xlu0 %675, %v37_v19   ;;  %v34_v24 = vld [vmem:[%s868_s0 + $0x78] sm:$0xff]  ;;  %v35_v25 = vld [vmem:[%s868_s0 + $0x80] sm:$0xff]  ;;  %v617_v26 = vpack.c.bf16 %v26_v23, %v25_v22  ;;  %v36_v29 = vld [vmem:[%s868_s0 + $0x88] sm:$0xff]  ;;  %vm450_vm9 = vcmask 15360   ;;  %vm453_vm10 = vcmask 23552   ;;  %vm456_vm11 = vcmask 31744  }
   0x7   :  { %v629_v27 = vpack.c.bf16 %v35_v25, %v34_v24  ;;  %v27_v28 = vld [vmem:[%s868_s0 + $0x40] sm:$0xff]  ;;  %v18_v31 = vld [vmem:[%s870_s1 + $0x8] sm:$0xff]  ;;  %s725_s0 = smov 126   ;;  %vm459_vm12 = vcmask 39936  }
   0x8   :  { %612 = vmatpush3.bf16.msra.mxu0 %v611_v13  ;;  %v17_v30 = vld [vmem:[%s870_s1] sm:$0xff]  ;;  %s726_s1 = smov 127   ;;  %v468_v42 = vld [vmem:[%s869_s3 + $0x8] sm:$0xff] }
   0x9   :  { %624 = vmatpush3.bf16.msra.mxu1 %v623_v14  ;;  %613 = vmatprep.subr.bf16.mxu0 %v721_v0  ;;  %v254_v18 = vld [vmem:[%s871_s2] sm:$0xff]  ;;  %v255_v19 = vld [vmem:[%s871_s2 + $0x8] sm:$0xff] }
   0xa   :  { %625 = vmatprep.subr.bf16.mxu1 %v721_v0 }
   0xc   :  { %615 = vmatpush3.bf16.msra.mxu0 %v614_v20 }
   0xd   :  { %627 = vmatpush3.bf16.msra.mxu1 %v626_v21  ;;  %616 = vmatprep.subr.bf16.mxu0 %v721_v0 }
   0xe   :  { %628 = vmatprep.subr.bf16.mxu1 %v721_v0 }
  0x10   :  { %618 = vmatpush3.bf16.msra.mxu0 %v617_v26 }
  0x11   :  { %630 = vmatpush3.bf16.msra.mxu1 %v629_v27  ;;  %531 = vmatprep.subr.mxu0 %v723_v8 }
  0x12   :  { %552 = vmatprep.subr.mxu1 %v723_v8 }
  0x14   :  { %532 = vmatpush3.msra.mxu0 %v27_v28 }
  0x15   :  { %553 = vmatpush3.msra.mxu1 %v36_v29  ;;  %534 = vmatmul.mubr.msk.f32.vlgmr.msra.gmra.mrb[0].mxu0 %vm43_vm1, %v17_v30 }
  0x16   :  { %555 = vmatmul.mubr.msk.f32.vlgmr.msra.gmra.mrb[0].mxu1 %vm43_vm1, %v18_v31  ;;  %631 = vmatprep.subr.bf16.mxu0 %v721_v0 }
  0x17   :  { %646 = vmatprep.subr.bf16.mxu1 %v721_v0  ;;  %579 = vmatprep.mubr.msk.f32.mxu0 %vm722_vm0, %v723_v8 }
  0x18   :  { %604 = vmatprep.mubr.msk.f32.mxu1 %vm722_vm0, %v723_v8 }
  0x85   :  { %v41_v32 = vpop.permute.xlu0 %40 }
  0xe8   :  { %v113_v33 = vpop.f32.mrb[0].mxu0 }
  0xe9   :  { %v114_v34 = vadd.f32 %v113_v33, %v41_v32  ;;  %v186_v35 = vpop.f32.mrb[0].mxu1  ;;  %v535_v36 = vpop.f32.mrb[1].mxu0 }
  0xea   :  { %v187_v37 = vadd.f32 %v186_v35, %v41_v32  ;;  %v556_v38 = vpop.f32.mrb[1].mxu1 }
  0xeb   :  { %v190_v39 = vmax.f32 %v114_v34, 0.0 }
  0xec   :  { %v191_v40 = vmax.f32 %v187_v37, 0.0 }
  0xee   :  { %v681_v41 = vpack.i.bf16 %v191_v40, %v190_v39 }
  0xf0   :  { %682 = vrot.lane.b32.xlu1 %v681_v41, %s725_s0  ;;  %677 = vrot.lane.b32.xlu0 %v681_v41, %s726_s1 }
  0xf4   :  { %687 = vrot.lane.b32.xlu1 %v681_v41, %s727_s5  ;;  %692 = vrot.lane.b32.xlu0 %v681_v41, %s728_s6 }
  0xf8   :  { %697 = vrot.lane.b32.xlu1 %v681_v41, %s729_s7  ;;  %702 = vrot.lane.b32.xlu0 %v681_v41, %s730_s8 }
  0xfc   :  { %707 = vrot.lane.b32.xlu1 %v681_v41, %s731_s9  ;;  %712 = vrot.lane.b32.xlu0 %v681_v41, %s732_s10 }
 0x100   :  { %717 = vrot.lane.b32.xlu1 %v681_v41, %s733_s11  ;;  %248 = vrot.lane.b32.xlu0 %v190_v39, %s734_s12 }
 0x104   :  { %250 = vrot.lane.b32.xlu1 %v191_v40, %s734_s12  ;;  %260 = vperm.xlu0 %675, %v468_v42  }
 0x162   :  { %v683_v43 = vpop.permute.xlu1 %682  ;;  %v678_v44 = vpop.permute.xlu0 %677 }
 0x163   :  { %v680_v45 = vunpack.i.h.bf16 %v678_v44  ;;  %v679_v46 = vunpack.i.l.bf16 %v678_v44  ;;  %v685_v51 = vunpack.i.h.bf16 %v683_v43  ;;  %v684_v52 = vunpack.i.l.bf16 %v683_v43 }
 0x165   :  { %v647_v47 = vpack.c.bf16 %v680_v45, %v191_v40  ;;  %v632_v48 = vpack.c.bf16 %v679_v46, %v190_v39 }
 0x166   :  { %v688_v49 = vpop.permute.xlu1 %687  ;;  %v693_v50 = vpop.permute.xlu0 %692 }
 0x167   :  { %v690_v53 = vunpack.i.h.bf16 %v688_v49  ;;  %v689_v54 = vunpack.i.l.bf16 %v688_v49  ;;  %633 = vmatpush3.bf16.msra.mxu0 %v632_v48  ;;  %648 = vmatpush3.bf16.msra.mxu1 %v647_v47  ;;  %v695_v59 = vunpack.i.h.bf16 %v693_v50  ;;  %v694_v60 = vunpack.i.l.bf16 %v693_v50 }
 0x168   :  { %634 = vmatprep.subr.bf16.mxu0 %v721_v0  ;;  %649 = vmatprep.subr.bf16.mxu1 %v721_v0 }
 0x169   :  { %v635_v55 = vpack.c.bf16 %v689_v54, %v684_v52  ;;  %v650_v56 = vpack.c.bf16 %v690_v53, %v685_v51 }
 0x16a   :  { %v698_v57 = vpop.permute.xlu1 %697  ;;  %v703_v58 = vpop.permute.xlu0 %702 }
 0x16b   :  { %v700_v61 = vunpack.i.h.bf16 %v698_v57  ;;  %v699_v62 = vunpack.i.l.bf16 %v698_v57  ;;  %636 = vmatpush3.bf16.msra.mxu0 %v635_v55  ;;  %651 = vmatpush3.bf16.msra.mxu1 %v650_v56  ;;  %v705_v3 = vunpack.i.h.bf16 %v703_v58  ;;  %v704_v4 = vunpack.i.l.bf16 %v703_v58 }
 0x16c   :  { %637 = vmatprep.subr.bf16.mxu0 %v721_v0  ;;  %652 = vmatprep.subr.bf16.mxu1 %v721_v0 }
 0x16d   :  { %v638_v63 = vpack.c.bf16 %v699_v62, %v694_v60  ;;  %v653_v1 = vpack.c.bf16 %v700_v61, %v695_v59 }
 0x16e   :  { %v708_v2 = vpop.permute.xlu1 %707  ;;  %v713_v7 = vpop.permute.xlu0 %712 }
 0x16f   :  { %v710_v5 = vunpack.i.h.bf16 %v708_v2  ;;  %v709_v6 = vunpack.i.l.bf16 %v708_v2  ;;  %639 = vmatpush3.bf16.msra.mxu0 %v638_v63  ;;  %654 = vmatpush3.bf16.msra.mxu1 %v653_v1  ;;  %v715_v12 = vunpack.i.h.bf16 %v713_v7  ;;  %v714_v13 = vunpack.i.l.bf16 %v713_v7 }
 0x170   :  { %640 = vmatprep.subr.bf16.mxu0 %v721_v0  ;;  %655 = vmatprep.subr.bf16.mxu1 %v721_v0 }
 0x171   :  { %v641_v9 = vpack.c.bf16 %v709_v6, %v704_v4  ;;  %v656_v10 = vpack.c.bf16 %v710_v5, %v705_v3 }
 0x172   :  { %v718_v11 = vpop.permute.xlu1 %717  ;;  %v249_v20 = vpop.permute.xlu0 %248 }
 0x173   :  { %v720_v14 = vunpack.i.h.bf16 %v718_v11  ;;  %v719_v15 = vunpack.i.l.bf16 %v718_v11  ;;  %642 = vmatpush3.bf16.msra.mxu0 %v641_v9  ;;  %657 = vmatpush3.bf16.msra.mxu1 %v656_v10 }
 0x174   :  { %643 = vmatprep.subr.bf16.mxu0 %v721_v0  ;;  %658 = vmatprep.subr.bf16.mxu1 %v721_v0 }
 0x175   :  { %v644_v16 = vpack.c.bf16 %v719_v15, %v714_v13  ;;  %v659_v17 = vpack.c.bf16 %v720_v14, %v715_v12 }
 0x176   :  { %v251_v21 = vpop.permute.xlu1 %250 }
 0x177   :  { %645 = vmatpush3.bf16.msra.mxu0 %v644_v16  ;;  %660 = vmatpush3.bf16.msra.mxu1 %v659_v17 }
 0x178   :  { %577 = vmatprep.subr.mxu0 %v723_v8  ;;  %602 = vmatprep.subr.mxu1 %v723_v8 }
 0x17b   :  { %578 = vmatpush3.msra.mxu0 %v249_v20  ;;  %603 = vmatpush3.msra.mxu1 %v251_v21 }
 0x17c   :  { %580 = vmatmul.mubr.msk.f32.vlgmr.msra.gmra.mrb[2].mxu0 %vm263_vm2, %v254_v18  ;;  %605 = vmatmul.mubr.msk.f32.vlgmr.msra.gmra.mrb[2].mxu1 %vm263_vm2, %v255_v19 }
 0x183   :  { %v261_v0 = vpop.permute.xlu0 %260 }
 0x24f   :  { %v333_v22 = vpop.f32.mrb[2].mxu0  ;;  %v406_v23 = vpop.f32.mrb[2].mxu1 }
 0x250   :  { %v334_v24 = vadd.f32 %v333_v22, %v261_v0  ;;  %v407_v8 = vadd.f32 %v406_v23, %v261_v0  ;;  %v581_v25 = vpop.f32.mrb[3].mxu0  ;;  %v606_v26 = vpop.f32.mrb[3].mxu1 }
 0x252   :  { %v410_v27 = vmax.f32 %v334_v24, 0.0  ;;  %v411_v28 = vmax.f32 %v407_v8, 0.0 }
 0x254   :  { %v416_v29 = vsel %vm412_vm3, %v411_v28, -inf  ;;  %v413_v30 = vsel %vm412_vm3, %v410_v27, -inf  ;;  %v420_v31 = vsel %vm419_vm4, %v410_v27, -inf  ;;  %v423_v32 = vsel %vm419_vm4, %v411_v28, -inf }
 0x255   :  { %417 = vmax.xlane.f32.xlu0 %v416_v29  ;;  %414 = vmax.xlane.f32.xlu1 %v413_v30  ;;  %v427_v33 = vsel %vm426_vm5, %v410_v27, -inf  ;;  %v430_v34 = vsel %vm426_vm5, %v411_v28, -inf  ;;  %v434_v35 = vsel %vm433_vm6, %v410_v27, -inf  ;;  %v437_v36 = vsel %vm433_vm6, %v411_v28, -inf }
 0x256   :  { %v441_v37 = vsel %vm440_vm7, %v410_v27, -inf  ;;  %v444_v38 = vsel %vm440_vm7, %v411_v28, -inf }
 0x259   :  { %421 = vmax.xlane.f32.xlu0 %v420_v31  ;;  %424 = vmax.xlane.f32.xlu1 %v423_v32 }
 0x25d   :  { %428 = vmax.xlane.f32.xlu0 %v427_v33  ;;  %431 = vmax.xlane.f32.xlu1 %v430_v34 }
 0x261   :  { %435 = vmax.xlane.f32.xlu0 %v434_v35  ;;  %438 = vmax.xlane.f32.xlu1 %v437_v36 }
 0x265   :  { %442 = vmax.xlane.f32.xlu0 %v441_v37  ;;  %445 = vmax.xlane.f32.xlu1 %v444_v38 }
 0x2e2   :  { %v418_v39 = vpop.xlane.xlu0 %417  ;;  %v415_v40 = vpop.xlane.xlu1 %414 }
 0x2e6   :  { %v422_v41 = vpop.xlane.xlu0 %421  ;;  %v425_v42 = vpop.xlane.xlu1 %424 }
 0x2e7   :  { %v448_v47 = vsel %vm447_vm8, %v415_v40, %v422_v41  ;;  %v449_v48 = vsel %vm447_vm8, %v418_v39, %v425_v42 }
 0x2ea   :  { %v429_v43 = vpop.xlane.xlu0 %428  ;;  %v432_v44 = vpop.xlane.xlu1 %431 }
 0x2eb   :  { %v451_v49 = vsel %vm450_vm9, %v448_v47, %v429_v43  ;;  %v452_v50 = vsel %vm450_vm9, %v449_v48, %v432_v44 }
 0x2ee   :  { %v436_v45 = vpop.xlane.xlu0 %435  ;;  %v439_v46 = vpop.xlane.xlu1 %438 }
 0x2ef   :  { %v454_v51 = vsel %vm453_vm10, %v451_v49, %v436_v45  ;;  %v455_v52 = vsel %vm453_vm10, %v452_v50, %v439_v46 }
 0x2f2   :  { %v443_v53 = vpop.xlane.xlu0 %442  ;;  %v446_v54 = vpop.xlane.xlu1 %445 }
 0x2f3   :  { %v457_v55 = vsel %vm456_vm11, %v454_v51, %v443_v53  ;;  %v458_v56 = vsel %vm456_vm11, %v455_v52, %v446_v54 }
 0x2f4   :  { %460 = vst.msk [vmem:[%s872_s4] sm:$0xff] %vm459_vm12, %v457_v55  ;;  %461 = vst.msk [vmem:[%s872_s4 + $0x8] sm:$0xff] %vm459_vm12, %v458_v56 }

</bundles_post_ra>
